<compile_context>
chip_gen: v6e
topology: v6e:2x2x1
jax: 0.10.0
libtpu: 0.0.40
codegen_flags: <defaults>
</compile_context>

<pallas_src>
import functools

import numpy as np
import jax
import jax.numpy as jnp
from jax.experimental import pallas as pl
from jax.experimental.pallas import tpu as pltpu  # noqa: F401  (kept for CompilerParams at scale)


# ----------------------------- Pallas kernel ------------------------------

def _fused_decoder_kernel(p_ref, w_ref, b_ref, g_ref, bt_ref, o_ref, *,
                          eps, n_phase, c_out):
    """ReLU + phase-fused ConvTranspose2d GEMM + bias + BatchNorm (batch stats).

    p_ref : (9*Cin, Mp)      shared 3x3-window patches (Mp = N*H*W on lanes)
    w_ref : (4*Cout, 9*Cin)  phase-embedded weights (rows = phase-major)
    b_ref : (1, Cout, 1)     conv bias
    g_ref : (1, Cout, 1)     BN gamma
    bt_ref: (1, Cout, 1)     BN beta
    o_ref : (4, Cout, Mp)    normalized output (phase, channel, position)
    """
    # Fused ReLU on the patch tile (ReLU(0) = 0, so it commutes with the zero
    # padding / patch extraction done in the wrapper).
    p = jnp.maximum(p_ref[...], 0.0)

    # One MXU GEMM: (4*Cout, 9*Cin) @ (9*Cin, Mp), f32 accumulation.
    y = jnp.dot(w_ref[...], p, preferred_element_type=jnp.float32)
    mp = y.shape[-1]
    # Sublane split 4*Cout -> (4, Cout): minor factor == 8 == sublane tile -> free.
    y = y.reshape(n_phase, c_out, mp) + b_ref[...]

    # BatchNorm2d training-mode batch statistics (biased variance), per channel.
    # Two-pass variance; y is VMEM-resident so the second pass is cheap.
    n_elems = n_phase * mp
    mean = jnp.sum(y, axis=(0, 2), keepdims=True) / n_elems
    d = y - mean
    var = jnp.sum(d * d, axis=(0, 2), keepdims=True) / n_elems

    scale = g_ref[...] * jax.lax.rsqrt(var + eps)
    shift = bt_ref[...] - mean * scale
    o_ref[...] = y * scale + shift


# ------------------------------- wrapper ----------------------------------

def decoder_block_forward(x_nchw, weight, bias, gamma, beta,
                          eps=1e-5, kernel_size=4, stride=2, padding=1,
                          compute_dtype=jnp.float32):
    """Forward pass of DecoderBlock. weight is ConvTranspose2d-style (Cin, Cout, kH, kW).

    compute_dtype: GEMM input dtype.  Kept f32 so the toy-size check matches the f32
    reference; at realistic sizes cast to bf16 (accumulation stays f32 via
    preferred_element_type) for higher MXU throughput.
    """
    assert (kernel_size, stride, padding) == (4, 2, 1), \
        "phase decomposition below is specialized to k=4, s=2, p=1"
    N, Cin, H, W = x_nchw.shape
    Cout = weight.shape[1]
    Hout, Wout = stride * H, stride * W
    Kb = 9 * Cin              # shared 3x3-window taps
    Mp = N * H * W            # output positions per phase (lane dim)

    # Channels-last input, zero-padded by 1 (covers out-of-range taps at the border).
    x_nhwc = jnp.transpose(x_nchw, (0, 2, 3, 1)).astype(jnp.float32)
    xp = jnp.pad(x_nhwc, ((0, 0), (1, 1), (1, 1), (0, 0)))          # (N, H+2, W+2, Cin)

    # Shared 3x3-window patch matrix: P[(dh*3+dw)*Cin + ci, m] = xp[n, a+dh, b+dw, ci].
    P = jnp.stack([xp[:, dh:dh + H, dw:dw + W, :]
                   for dh in range(3) for dw in range(3)], axis=3)   # (N, H, W, 9, Cin)
    P = P.reshape(Mp, Kb).T.astype(compute_dtype)                    # (Kb, Mp)

    # Phase-embedded weight matrix.  Output pixel (2a+ph, 2b+pw) reads window offset
    # (dh, dw) = (ph+th, pw+tw), th,tw in {0,1}, against kernel tap
    # (kh, kw) = (3-ph-2*th, 3-pw-2*tw); all other 3x3 positions are zero.
    w_khkw = jnp.transpose(weight, (2, 3, 0, 1)).astype(jnp.float32)  # (kH, kW, Cin, Cout)
    phase_mats = []
    for ph in range(2):
        for pw in range(2):
            th_idx = jnp.array([3 - ph, 1 - ph])
            tw_idx = jnp.array([3 - pw, 1 - pw])
            sub = w_khkw[th_idx][:, tw_idx]                           # (2, 2, Cin, Cout)
            w3 = jnp.pad(sub, ((ph, 1 - ph), (pw, 1 - pw), (0, 0), (0, 0)))  # (3,3,Cin,Cout)
            phase_mats.append(jnp.transpose(w3, (3, 0, 1, 2)).reshape(Cout, Kb))
    w_mat = jnp.concatenate(phase_mats, axis=0).astype(compute_dtype)  # (4*Cout, Kb)

    b_col = bias.reshape(1, Cout, 1).astype(jnp.float32)
    g_col = gamma.reshape(1, Cout, 1).astype(jnp.float32)
    bt_col = beta.reshape(1, Cout, 1).astype(jnp.float32)

    # Single fused pallas_call: whole operands VMEM-resident (patches ~72 KiB,
    # weights/result tiny) -> no grid, no per-step overhead, no repeated HBM passes.
    y = pl.pallas_call(
        functools.partial(_fused_decoder_kernel, eps=eps, n_phase=4, c_out=Cout),
        out_shape=jax.ShapeDtypeStruct((4, Cout, Mp), jnp.float32),
    )(P, w_mat, b_col, g_col, bt_col)

    # Undo the phase interleave: (ph, pw, co, n, a, b) -> (n, co, 2a+ph, 2b+pw).
    y = y.reshape(2, 2, Cout, N, H, W)
    out = jnp.transpose(y, (3, 2, 4, 0, 5, 1)).reshape(N, Cout, Hout, Wout)

    # TODO(synk): Dropout2d path (dropout=True) would use pltpu.prng_seed /
    # pltpu.prng_random_bits inside the fused kernel; module default dropout=False
    # makes it an identity.
    return out


# ------------------------------ reference ---------------------------------

def reference_forward(x, weight, bias, gamma, beta, eps=1e-5):
    fx = jnp.maximum(x, 0.0)
    fx = jnp.transpose(fx, (0, 2, 3, 1))                   # NHWC
    w_flip = weight[:, :, ::-1, ::-1]                      # flip kernel
    rhs = jnp.transpose(w_flip, (2, 3, 0, 1))              # HWIO
    y = jax.lax.conv_general_dilated(
        fx, rhs, window_strides=(1, 1), padding=((2, 2), (2, 2)),
        lhs_dilation=(2, 2),
        dimension_numbers=('NHWC', 'HWIO', 'NHWC'))
    y = y + bias
    mean = jnp.mean(y, axis=(0, 1, 2))
    var = jnp.mean((y - mean) ** 2, axis=(0, 1, 2))
    y = (y - mean) / jnp.sqrt(var + eps) * gamma + beta
    return jnp.transpose(y, (0, 3, 1, 2))


# --------------------------------- main ------------------------------------

if __name__ == "__main__":
    key = jax.random.PRNGKey(0)
    N, Cin, H, W = 2, 4, 16, 16        # x: (2, 4, 16, 16) NCHW
    Cout = 8

    k_x, k_w, k_b, k_g, k_beta = jax.random.split(key, 5)
    x = jax.random.normal(k_x, (N, Cin, H, W), jnp.float32)
    weight = jax.random.normal(k_w, (Cin, Cout, 4, 4), jnp.float32) * 0.1  # ConvTranspose2d weight
    bias = jax.random.normal(k_b, (Cout,), jnp.float32) * 0.1
    gamma = 1.0 + 0.1 * jax.random.normal(k_g, (Cout,), jnp.float32)
    beta = 0.1 * jax.random.normal(k_beta, (Cout,), jnp.float32)

    fwd = jax.jit(lambda a, b, c, d, e: decoder_block_forward(a, b, c, d, e))
    out = fwd(x, weight, bias, gamma, beta)
    out = jax.block_until_ready(out)

    ref = reference_forward(x, weight, bias, gamma, beta)
    np.testing.assert_allclose(np.asarray(out), np.asarray(ref), rtol=2e-3, atol=2e-3)

    print("KERNEL_OK")
</pallas_src>

<mosaic_0001>
module attributes {stable_mosaic.version = 11 : i64} {
  func.func @_fused_decoder_kernel(%arg0: memref<36x512xf32, #tpu.memory_space<vmem>>, %arg1: memref<32x36xf32, #tpu.memory_space<vmem>>, %arg2: memref<1x8x1xf32, #tpu.memory_space<vmem>>, %arg3: memref<1x8x1xf32, #tpu.memory_space<vmem>>, %arg4: memref<1x8x1xf32, #tpu.memory_space<vmem>>, %arg5: memref<4x8x512xf32, #tpu.memory_space<vmem>>) attributes {dimension_semantics = [], scalar_prefetch = 0 : i64, scratch_operands = 0 : i64, tpu.core_type = #tpu.core_type<tc>} {
    %c0 = arith.constant 0 : index
    %c0_0 = arith.constant 0 : index
    %0 = vector.load %arg0[%c0, %c0_0] : memref<36x512xf32, #tpu.memory_space<vmem>>, vector<36x512xf32>
    %cst = arith.constant 0.000000e+00 : f32
    %1 = vector.broadcast %cst : f32 to vector<36x512xf32>
    %2 = arith.maximumf %0, %1 : vector<36x512xf32>
    %c0_1 = arith.constant 0 : index
    %c0_2 = arith.constant 0 : index
    %3 = vector.load %arg1[%c0_1, %c0_2] : memref<32x36xf32, #tpu.memory_space<vmem>>, vector<32x36xf32>
    %cst_3 = arith.constant dense<0.000000e+00> : vector<32x512xf32>
    %4 = tpu.matmul %3, %2, %cst_3 {dimension_numbers = #tpu.dot_dimension_numbers<[1], [0], [0], [1], [0, 0, 1, 1], [], []>} : vector<32x36xf32>, vector<36x512xf32>, vector<32x512xf32> -> vector<32x512xf32>
    %5 = vector.shape_cast %4 : vector<32x512xf32> to vector<4x8x512xf32>
    %c0_4 = arith.constant 0 : index
    %c0_5 = arith.constant 0 : index
    %c0_6 = arith.constant 0 : index
    %6 = vector.load %arg2[%c0_4, %c0_5, %c0_6] : memref<1x8x1xf32, #tpu.memory_space<vmem>>, vector<1x8x1xf32>
    %7 = vector.broadcast %6 : vector<1x8x1xf32> to vector<4x8x512xf32>
    %8 = arith.addf %5, %7 : vector<4x8x512xf32>
    %cst_7 = arith.constant dense<0.000000e+00> : vector<8xf32>
    %9 = vector.multi_reduction <add>, %8, %cst_7 [0, 2] : vector<4x8x512xf32> to vector<8xf32>
    %10 = vector.shape_cast %9 : vector<8xf32> to vector<1x8x1xf32>
    %cst_8 = arith.constant 2.048000e+03 : f32
    %11 = vector.broadcast %cst_8 : f32 to vector<1x8x1xf32>
    %12 = arith.divf %10, %11 : vector<1x8x1xf32>
    %13 = vector.broadcast %12 : vector<1x8x1xf32> to vector<4x8x512xf32>
    %14 = arith.subf %8, %13 : vector<4x8x512xf32>
    %15 = arith.mulf %14, %14 : vector<4x8x512xf32>
    %cst_9 = arith.constant dense<0.000000e+00> : vector<8xf32>
    %16 = vector.multi_reduction <add>, %15, %cst_9 [0, 2] : vector<4x8x512xf32> to vector<8xf32>
    %17 = vector.shape_cast %16 : vector<8xf32> to vector<1x8x1xf32>
    %cst_10 = arith.constant 2.048000e+03 : f32
    %18 = vector.broadcast %cst_10 : f32 to vector<1x8x1xf32>
    %19 = arith.divf %17, %18 : vector<1x8x1xf32>
    %c0_11 = arith.constant 0 : index
    %c0_12 = arith.constant 0 : index
    %c0_13 = arith.constant 0 : index
    %20 = vector.load %arg3[%c0_11, %c0_12, %c0_13] : memref<1x8x1xf32, #tpu.memory_space<vmem>>, vector<1x8x1xf32>
    %cst_14 = arith.constant 9.99999974E-6 : f32
    %21 = vector.broadcast %cst_14 : f32 to vector<1x8x1xf32>
    %22 = arith.addf %19, %21 : vector<1x8x1xf32>
    %23 = math.rsqrt %22 : vector<1x8x1xf32>
    %24 = arith.mulf %20, %23 : vector<1x8x1xf32>
    %c0_15 = arith.constant 0 : index
    %c0_16 = arith.constant 0 : index
    %c0_17 = arith.constant 0 : index
    %25 = vector.load %arg4[%c0_15, %c0_16, %c0_17] : memref<1x8x1xf32, #tpu.memory_space<vmem>>, vector<1x8x1xf32>
    %26 = arith.mulf %12, %24 : vector<1x8x1xf32>
    %27 = arith.subf %25, %26 : vector<1x8x1xf32>
    %28 = vector.broadcast %24 : vector<1x8x1xf32> to vector<4x8x512xf32>
    %29 = arith.mulf %8, %28 : vector<4x8x512xf32>
    %30 = vector.broadcast %27 : vector<1x8x1xf32> to vector<4x8x512xf32>
    %31 = arith.addf %29, %30 : vector<4x8x512xf32>
    %c0_18 = arith.constant 0 : index
    %c0_19 = arith.constant 0 : index
    %c0_20 = arith.constant 0 : index
    %32 = vector.load %arg5[%c0_18, %c0_19, %c0_20] : memref<4x8x512xf32, #tpu.memory_space<vmem>>, vector<4x8x512xf32>
    tpu.vector_store %arg5[%c0_18, %c0_19, %c0_20], %31 {strides = array<i32>} : memref<4x8x512xf32, #tpu.memory_space<vmem>>, vector<4x8x512xf32>,
    return
  }
}

</mosaic_0001>

<bundles_post_ra>
// kernel: _lambda_.1
= control target key start
LH: loop header
LB: loop body
LE: loop exit
PB: predicated region body
PF: predicated region fallthrough
CT: control target
= control target key end

     0   :  { %vm77_vm0 = vcmask 1043456   ;;  %v446_v3 = vmov 0.0   ;;  %v447_v9 = vmov 0   ;;  %vm64_vm1 = vcmask 293888   ;;  %s707_s0 = inlined_call_operand.vmem [shape: f32[36,512], index: 0, kind: input, shape index: {}]   ;;  %s708_s1 = inlined_call_operand.vmem [shape: f32[32,36], index: 1, kind: input, shape index: {}]   ;;  %s709_s2 = inlined_call_operand.vmem [shape: f32[1,8,1], index: 2, kind: input, shape index: {}]   ;;  %s710_s3 = inlined_call_operand.vmem [shape: f32[1,8,1], index: 3, kind: input, shape index: {}]   ;;  %s711_s4 = inlined_call_operand.vmem [shape: f32[1,8,1], index: 4, kind: input, shape index: {}]   ;;  %s712_s5 = inlined_call_operand.vmem [shape: f32[4,8,512], index: 5, kind: output, shape index: {}]  }
   0x1   :  { %v37_v0 = vld [vmem:[%s707_s0 + $0x88] sm:$0xf]  ;;  %v39_v1 = vld [vmem:[%s707_s0 + $0x98] sm:$0xf]  ;;  %v36_v2 = vld [vmem:[%s707_s0 + $0x80] sm:$0xf]  ;;  %154 = vmatprep.mubr.f32.mxu0 %v446_v3  ;;  %243 = vmatprep.mubr.f32.mxu1 %v446_v3 }
   0x2   :  { %v57_v4 = vmax.f32 %v37_v0, 0.0  ;;  %v59_v5 = vmax.f32 %v39_v1, 0.0  ;;  %v56_v6 = vmax.f32 %v36_v2, 0.0  ;;  %v38_v7 = vld [vmem:[%s707_s0 + $0x90] sm:$0xf]  ;;  %v33_v8 = vld [vmem:[%s707_s0 + $0x68] sm:$0xff]  ;;  %442 = vset.pattern.permute.xlu0 %v447_v9  ;;  %443 = vset.pattern.permute.xlu1 %v447_v9 }
   0x3   :  { %v58_v10 = vmax.f32 %v38_v7, 0.0  ;;  %v53_v11 = vmax.f32 %v33_v8, 0.0  ;;  %v35_v12 = vld [vmem:[%s707_s0 + $0x78] sm:$0xff]  ;;  %v32_v13 = vld [vmem:[%s707_s0 + $0x60] sm:$0xff]  ;;  %v34_v14 = vld [vmem:[%s707_s0 + $0x70] sm:$0xff] }
   0x4   :  { %428 = vmatprep.subr.msk.mxu0 %vm77_vm0, %v57_v4  ;;  %434 = vmatprep.subr.msk.mxu1 %vm77_vm0, %v59_v5  ;;  %v55_v15 = vmax.f32 %v35_v12, 0.0  ;;  %v52_v16 = vmax.f32 %v32_v13, 0.0  ;;  %v54_v17 = vmax.f32 %v34_v14, 0.0  ;;  %v29_v18 = vld [vmem:[%s707_s0 + $0x48] sm:$0xff]  ;;  %v31_v19 = vld [vmem:[%s707_s0 + $0x58] sm:$0xff]  ;;  %v28_v20 = vld [vmem:[%s707_s0 + $0x40] sm:$0xff] }
   0x5   :  { %429 = vmatpush1.msk.msra.mxu0 %vm77_vm0, %v56_v6  ;;  %435 = vmatpush1.msk.msra.mxu1 %vm77_vm0, %v58_v10  ;;  %v49_v21 = vmax.f32 %v29_v18, 0.0  ;;  %v51_v22 = vmax.f32 %v31_v19, 0.0  ;;  %v48_v23 = vmax.f32 %v28_v20, 0.0  ;;  %v30_v24 = vld [vmem:[%s707_s0 + $0x50] sm:$0xff]  ;;  %v25_v25 = vld [vmem:[%s707_s0 + $0x28] sm:$0xff]  ;;  %v27_v26 = vld [vmem:[%s707_s0 + $0x38] sm:$0xff] }
   0x6   :  { %114 = vmatprep.subr.mxu0 %v53_v11  ;;  %203 = vmatprep.subr.mxu1 %v55_v15  ;;  %v50_v27 = vmax.f32 %v30_v24, 0.0  ;;  %v45_v28 = vmax.f32 %v25_v25, 0.0  ;;  %v47_v29 = vmax.f32 %v27_v26, 0.0  ;;  %v24_v30 = vld [vmem:[%s707_s0 + $0x20] sm:$0xff]  ;;  %v26_v31 = vld [vmem:[%s707_s0 + $0x30] sm:$0xff]  ;;  %v21_v32 = vld [vmem:[%s707_s0 + $0x8] sm:$0xff] }
   0x7   :  { %115 = vmatpush1.msra.mxu0 %v52_v16  ;;  %204 = vmatpush1.msra.mxu1 %v54_v17  ;;  %v44_v33 = vmax.f32 %v24_v30, 0.0  ;;  %v46_v34 = vmax.f32 %v26_v31, 0.0  ;;  %v23_v35 = vld [vmem:[%s707_s0 + $0x18] sm:$0xff]  ;;  %v20_v36 = vld [vmem:[%s707_s0] sm:$0xff]  ;;  %v22_v37 = vld [vmem:[%s707_s0 + $0x10] sm:$0xff]  ;;  %v41_v38 = vmax.f32 %v21_v32, 0.0 }
   0x8   :  { %116 = vmatprep.subr.mxu0 %v49_v21  ;;  %205 = vmatprep.subr.mxu1 %v51_v22  ;;  %v43_v39 = vmax.f32 %v23_v35, 0.0  ;;  %v40_v40 = vmax.f32 %v20_v36, 0.0  ;;  %v42_v41 = vmax.f32 %v22_v37, 0.0  ;;  %v60_v42 = vld [vmem:[%s708_s1] sm:$0xff]  ;;  %v61_v44 = vld [vmem:[%s708_s1 + $0x8] sm:$0xff]  ;;  %v62_v45 = vld [vmem:[%s708_s1 + $0x10] sm:$0xff] }
   0x9   :  { %117 = vmatpush1.msra.mxu0 %v48_v23  ;;  %206 = vmatpush1.msra.mxu1 %v50_v27  ;;  %v268_v43 = vld [vmem:[%s709_s2] sm:$0xff]  ;;  %v63_v46 = vld [vmem:[%s708_s1 + $0x18] sm:$0xff] }
   0xa   :  { %118 = vmatprep.subr.mxu0 %v45_v28  ;;  %207 = vmatprep.subr.mxu1 %v47_v29 }
   0xb   :  { %119 = vmatpush1.msra.mxu0 %v44_v33  ;;  %208 = vmatpush1.msra.mxu1 %v46_v34 }
   0xc   :  { %120 = vmatprep.subr.mxu0 %v41_v38  ;;  %209 = vmatprep.subr.mxu1 %v43_v39 }
   0xd   :  { %121 = vmatpush1.msra.mxu0 %v40_v40  ;;  %210 = vmatpush1.msra.mxu1 %v42_v41 }
   0xe   :  { %430 = vmatmul.mubr.msk.f32.vlgmr.msra.gmra.mxu0 %vm64_vm1, %v60_v42  ;;  %436 = vmatmul.mubr.msk.f32.vlgmr.msra.gmra.mxu1 %vm64_vm1, %v60_v42 }
   0xf   :  { %160 = vmatprep.mubr.f32.mxu0 %v446_v3  ;;  %249 = vmatprep.mubr.f32.mxu1 %v446_v3 }
  0x10   :  { %271 = vperm.xlu0 %442, %v268_v43  }
  0x12   :  { %431 = vmatmul.mubr.msk.f32.gmra.mxu0 %vm64_vm1, %v61_v44  ;;  %437 = vmatmul.mubr.msk.f32.gmra.mxu1 %vm64_vm1, %v61_v44 }
  0x13   :  { %166 = vmatprep.mubr.f32.mxu0 %v446_v3  ;;  %255 = vmatprep.mubr.f32.mxu1 %v446_v3 }
  0x16   :  { %432 = vmatmul.mubr.msk.f32.gmra.mxu0 %vm64_vm1, %v62_v45  ;;  %438 = vmatmul.mubr.msk.f32.gmra.mxu1 %vm64_vm1, %v62_v45 }
  0x17   :  { %172 = vmatprep.mubr.f32.mxu0 %v446_v3  ;;  %261 = vmatprep.mubr.f32.mxu1 %v446_v3 }
  0x1a   :  { %433 = vmatmul.mubr.msk.f32.gmra.mxu0 %vm64_vm1, %v63_v46  ;;  %439 = vmatmul.mubr.msk.f32.gmra.mxu1 %vm64_vm1, %v63_v46 }
  0x8b   :  { %v272_v47 = vpop.permute.xlu0 %271 }
  0xce   :  { %v156_v48 = vpop.f32.mrf.mxu0  ;;  %v245_v49 = vpop.f32.mrf.mxu1 }
  0xcf   :  { %v573_v51 = vadd.f32 %v272_v47, %v156_v48  ;;  %v577_v55 = vadd.f32 %v272_v47, %v245_v49 }
  0xd0   :  { %v158_v50 = vpop.f32.mrf.mxu0  ;;  %v247_v53 = vpop.f32.mrf.mxu1 }
  0xd1   :  { %v575_v52 = vadd.f32 %v272_v47, %v158_v50  ;;  %v581_v57 = vadd.f32 %v272_v47, %v247_v53 }
  0xd2   :  { %v162_v54 = vpop.f32.mrf.mxu0  ;;  %v251_v59 = vpop.f32.mrf.mxu1 }
  0xd3   :  { %v290_v56 = vadd.f32 %v575_v52, %v573_v51  ;;  %v585_v62 = vadd.f32 %v272_v47, %v162_v54  ;;  %v590_v3 = vadd.f32 %v272_v47, %v251_v59 }
  0xd4   :  { %v164_v60 = vpop.f32.mrf.mxu0  ;;  %v253_v1 = vpop.f32.mrf.mxu1 }
  0xd5   :  { %v291_v58 = vadd.f32 %v290_v56, %v577_v55  ;;  %v588_v0 = vadd.f32 %v272_v47, %v164_v60  ;;  %v593_v5 = vadd.f32 %v272_v47, %v253_v1 }
  0xd6   :  { %v168_v2 = vpop.f32.mrf.mxu0  ;;  %v257_v7 = vpop.f32.mrf.mxu1 }
  0xd7   :  { %v292_v61 = vadd.f32 %v291_v58, %v581_v57  ;;  %v597_v10 = vadd.f32 %v272_v47, %v168_v2  ;;  %v602_v15 = vadd.f32 %v272_v47, %v257_v7 }
  0xd8   :  { %v170_v8 = vpop.f32.mrf.mxu0  ;;  %v259_v13 = vpop.f32.mrf.mxu1 }
  0xd9   :  { %v293_v63 = vadd.f32 %v292_v61, %v585_v62  ;;  %v600_v12 = vadd.f32 %v272_v47, %v170_v8  ;;  %v605_v17 = vadd.f32 %v272_v47, %v259_v13 }
  0xda   :  { %v174_v14 = vpop.f32.mrf.mxu0  ;;  %v263_v19 = vpop.f32.mrf.mxu1 }
  0xdb   :  { %v294_v4 = vadd.f32 %v293_v63, %v588_v0  ;;  %v609_v22 = vadd.f32 %v272_v47, %v174_v14  ;;  %v614_v26 = vadd.f32 %v272_v47, %v263_v19 }
  0xdc   :  { %v176_v20 = vpop.f32.mrf.mxu0  ;;  %v265_v25 = vpop.f32.mrf.mxu1 }
  0xdd   :  { %v295_v6 = vadd.f32 %v294_v4, %v590_v3  ;;  %v612_v24 = vadd.f32 %v272_v47, %v176_v20  ;;  %v617_v28 = vadd.f32 %v272_v47, %v265_v25 }
  0xdf   :  { %v296_v9 = vadd.f32 %v295_v6, %v593_v5 }
  0xe1   :  { %v297_v11 = vadd.f32 %v296_v9, %v597_v10 }
  0xe3   :  { %v298_v16 = vadd.f32 %v297_v11, %v600_v12 }
  0xe5   :  { %v299_v18 = vadd.f32 %v298_v16, %v602_v15 }
  0xe7   :  { %v300_v21 = vadd.f32 %v299_v18, %v605_v17 }
  0xe9   :  { %v301_v23 = vadd.f32 %v300_v21, %v609_v22 }
  0xeb   :  { %v302_v27 = vadd.f32 %v301_v23, %v612_v24 }
  0xed   :  { %v303_v29 = vadd.f32 %v302_v27, %v614_v26 }
  0xef   :  { %v304_v30 = vadd.f32 %v303_v29, %v617_v28 }
  0xf1   :  { %305 = vadd.xlane.f32.xlu0 %v304_v30 }
 0x17a   :  { %v306_v31 = vpop.xlane.xlu0 %305 }
 0x17b   :  { %v308_v32 = vmul.f32 0.00048828125, %v306_v31 }
 0x17d   :  { %v309_v33 = vsub.f32 %v573_v51, %v308_v32  ;;  %v310_v34 = vsub.f32 %v575_v52, %v308_v32  ;;  %v311_v35 = vsub.f32 %v577_v55, %v308_v32  ;;  %v312_v38 = vsub.f32 %v581_v57, %v308_v32 }
 0x17e   :  { %v313_v39 = vsub.f32 %v585_v62, %v308_v32  ;;  %v314_v42 = vsub.f32 %v588_v0, %v308_v32  ;;  %v315_v45 = vsub.f32 %v590_v3, %v308_v32  ;;  %v316_v48 = vsub.f32 %v593_v5, %v308_v32 }
 0x17f   :  { %v325_v36 = vmul.f32 %v309_v33, %v309_v33  ;;  %v326_v37 = vmul.f32 %v310_v34, %v310_v34  ;;  %v327_v40 = vmul.f32 %v311_v35, %v311_v35  ;;  %v328_v43 = vmul.f32 %v312_v38, %v312_v38 }
 0x180   :  { %v329_v46 = vmul.f32 %v313_v39, %v313_v39  ;;  %v330_v49 = vmul.f32 %v314_v42, %v314_v42  ;;  %v317_v53 = vsub.f32 %v597_v10, %v308_v32  ;;  %v331_v54 = vmul.f32 %v315_v45, %v315_v45  ;;  %v363_v39 = vld [vmem:[%s711_s4] sm:$0xff] }
 0x181   :  { %v341_v41 = vadd.f32 %v326_v37, %v325_v36  ;;  %v318_v58 = vsub.f32 %v600_v12, %v308_v32  ;;  %v332_v59 = vmul.f32 %v316_v48, %v316_v48  ;;  %v319_v61 = vsub.f32 %v602_v15, %v308_v32  ;;  %v359_v36 = vld [vmem:[%s710_s3] sm:$0xff] }
 0x182   :  { %v333_v63 = vmul.f32 %v317_v53, %v317_v53  ;;  %v320_v2 = vsub.f32 %v605_v17, %v308_v32  ;;  %v321_v7 = vsub.f32 %v609_v22, %v308_v32  ;;  %v322_v11 = vsub.f32 %v612_v24, %v308_v32 }
 0x183   :  { %v342_v44 = vadd.f32 %v341_v41, %v327_v40  ;;  %v334_v4 = vmul.f32 %v318_v58, %v318_v58  ;;  %v335_v8 = vmul.f32 %v319_v61, %v319_v61  ;;  %v323_v16 = vsub.f32 %v614_v26, %v308_v32 }
 0x184   :  { %v336_v13 = vmul.f32 %v320_v2, %v320_v2  ;;  %v337_v18 = vmul.f32 %v321_v7, %v321_v7  ;;  %v324_v20 = vsub.f32 %v617_v28, %v308_v32  ;;  %v338_v21 = vmul.f32 %v322_v11, %v322_v11 }
 0x185   :  { %v343_v47 = vadd.f32 %v342_v44, %v328_v43  ;;  %v339_v25 = vmul.f32 %v323_v16, %v323_v16 }
 0x186   :  { %v340_v29 = vmul.f32 %v324_v20, %v324_v20 }
 0x187   :  { %v344_v50 = vadd.f32 %v343_v47, %v329_v46 }
 0x189   :  { %v345_v56 = vadd.f32 %v344_v50, %v330_v49 }
 0x18b   :  { %v346_v60 = vadd.f32 %v345_v56, %v331_v54 }
 0x18d   :  { %v347_v1 = vadd.f32 %v346_v60, %v332_v59 }
 0x18f   :  { %v348_v6 = vadd.f32 %v347_v1, %v333_v63 }
 0x191   :  { %v349_v9 = vadd.f32 %v348_v6, %v334_v4 }
 0x193   :  { %v350_v14 = vadd.f32 %v349_v9, %v335_v8 }
 0x195   :  { %v351_v19 = vadd.f32 %v350_v14, %v336_v13 }
 0x197   :  { %v352_v23 = vadd.f32 %v351_v19, %v337_v18 }
 0x199   :  { %v353_v27 = vadd.f32 %v352_v23, %v338_v21 }
 0x19b   :  { %v354_v30 = vadd.f32 %v353_v27, %v339_v25 }
 0x19d   :  { %v355_v31 = vadd.f32 %v354_v30, %v340_v29 }
 0x19f   :  { %356 = vadd.xlane.f32.xlu1 %v355_v31 }
 0x228   :  { %v357_v33 = vpop.xlane.xlu1 %356 }
 0x229   :  { %v358_v34 = vmul.f32 0.00048828125, %v357_v33 }
 0x22b   :  { %v360_v35 = vadd.f32 1e-05, %v358_v34 }
 0x22d   :  { %444 = vrsqrt.f32 %v360_v35 }
 0x23a   :  { %v445_v37 = vpop.eup %444 }
 0x23b   :  { %v362_v38 = vmul.f32 %v445_v37, %v359_v36 }
 0x23d   :  { %368 = vperm.xlu1 %443, %v362_v38   ;;  %v364_v40 = vmul.f32 %v362_v38, %v308_v32 }
 0x23f   :  { %v365_v41 = vsub.f32 %v363_v39, %v364_v40 }
 0x241   :  { %389 = vperm.xlu1 %443, %v365_v41  }
 0x2b8   :  { %v369_v42 = vpop.permute.xlu1 %368 }
 0x2b9   :  { %v371_v43 = vmul.f32 %v369_v42, %v573_v51  ;;  %v372_v44 = vmul.f32 %v369_v42, %v575_v52  ;;  %v373_v45 = vmul.f32 %v369_v42, %v577_v55  ;;  %v374_v46 = vmul.f32 %v369_v42, %v581_v57 }
 0x2ba   :  { %v375_v47 = vmul.f32 %v369_v42, %v585_v62  ;;  %v376_v48 = vmul.f32 %v369_v42, %v588_v0  ;;  %v377_v49 = vmul.f32 %v369_v42, %v590_v3  ;;  %v378_v50 = vmul.f32 %v369_v42, %v593_v5 }
 0x2bb   :  { %v379_v32 = vmul.f32 %v369_v42, %v597_v10  ;;  %v380_v53 = vmul.f32 %v369_v42, %v600_v12  ;;  %v381_v51 = vmul.f32 %v369_v42, %v602_v15  ;;  %v382_v52 = vmul.f32 %v369_v42, %v605_v17 }
 0x2bc   :  { %v383_v55 = vmul.f32 %v369_v42, %v609_v22  ;;  %v384_v57 = vmul.f32 %v369_v42, %v612_v24  ;;  %v385_v62 = vmul.f32 %v369_v42, %v614_v26  ;;  %v386_v0 = vmul.f32 %v369_v42, %v617_v28  ;;  %v390_v54 = vpop.permute.xlu1 %389 }
 0x2bd   :  { %v392_v3 = vadd.f32 %v390_v54, %v371_v43  ;;  %v393_v56 = vadd.f32 %v390_v54, %v372_v44  ;;  %v394_v5 = vadd.f32 %v390_v54, %v373_v45  ;;  %v395_v58 = vadd.f32 %v390_v54, %v374_v46 }
 0x2be   :  { %v396_v10 = vadd.f32 %v390_v54, %v375_v47  ;;  %v397_v59 = vadd.f32 %v390_v54, %v376_v48  ;;  %v398_v12 = vadd.f32 %v390_v54, %v377_v49  ;;  %v399_v60 = vadd.f32 %v390_v54, %v378_v50 }
 0x2bf   :  { %v400_v15 = vadd.f32 %v390_v54, %v379_v32  ;;  %v401_v61 = vadd.f32 %v390_v54, %v380_v53  ;;  %v402_v17 = vadd.f32 %v390_v54, %v381_v51  ;;  %v403_v63 = vadd.f32 %v390_v54, %v382_v52  ;;  %408 = vst [vmem:[%s712_s5] sm:$0xff] %v392_v3 }
 0x2c0   :  { %409 = vst [vmem:[%s712_s5 + $0x8] sm:$0xff] %v393_v56  ;;  %410 = vst [vmem:[%s712_s5 + $0x10] sm:$0xff] %v394_v5  ;;  %v404_v22 = vadd.f32 %v390_v54, %v383_v55  ;;  %v405_v24 = vadd.f32 %v390_v54, %v384_v57  ;;  %v406_v26 = vadd.f32 %v390_v54, %v385_v62 }
 0x2c1   :  { %411 = vst [vmem:[%s712_s5 + $0x18] sm:$0xff] %v395_v58  ;;  %v407_v28 = vadd.f32 %v390_v54, %v386_v0  ;;  %412 = vst [vmem:[%s712_s5 + $0x20] sm:$0xff] %v396_v10 }
 0x2c2   :  { %413 = vst [vmem:[%s712_s5 + $0x28] sm:$0xff] %v397_v59  ;;  %414 = vst [vmem:[%s712_s5 + $0x30] sm:$0xff] %v398_v12 }
 0x2c3   :  { %415 = vst [vmem:[%s712_s5 + $0x38] sm:$0xff] %v399_v60  ;;  %416 = vst [vmem:[%s712_s5 + $0x40] sm:$0xff] %v400_v15 }
 0x2c4   :  { %417 = vst [vmem:[%s712_s5 + $0x48] sm:$0xff] %v401_v61  ;;  %418 = vst [vmem:[%s712_s5 + $0x50] sm:$0xff] %v402_v17 }
 0x2c5   :  { %419 = vst [vmem:[%s712_s5 + $0x58] sm:$0xff] %v403_v63  ;;  %420 = vst [vmem:[%s712_s5 + $0x60] sm:$0xff] %v404_v22 }
 0x2c6   :  { %421 = vst [vmem:[%s712_s5 + $0x68] sm:$0xff] %v405_v24  ;;  %422 = vst [vmem:[%s712_s5 + $0x70] sm:$0xff] %v406_v26 }
 0x2c7   :  { %423 = vst [vmem:[%s712_s5 + $0x78] sm:$0xff] %v407_v28 }

</bundles_post_ra>
